<compile_context>
chip_gen: v7x
topology: tpu7x:2x2x1
jax: 0.10.0
libtpu: 0.0.40
codegen_flags: <defaults>
</compile_context>

<pallas_src>
import jax
import jax.numpy as jnp
from jax.experimental import pallas as pl
from jax.experimental.pallas import tpu as pltpu


def _spectral_mix_kernel(xr_ref, xi_ref, wr_ref, wi_ref, or_ref, oi_ref):
    """Per-corner complex channel mixing with modes on the lane axis.

    xr/xi : (Ci, TB, Mp) f32      wr/wi : (Ci, Co, Mp) f32
    or/oi : (TB, Co, Mp) f32
    out[b, o, m] = sum_i x[i, b, m] * w[i, o, m]   (complex arithmetic)
    """
    ci = xr_ref.shape[0]

    def gauss(i):
        # 3-multiply (Gauss) complex product, broadcast over (TB, Co, Mp).
        a = xr_ref[i][:, None, :]      # (TB, 1, Mp)
        b = xi_ref[i][:, None, :]
        c = wr_ref[i][None, :, :]      # (1, Co, Mp)
        d = wi_ref[i][None, :, :]
        p1 = a * c
        p2 = b * d
        p3 = (a + b) * (c + d)
        return p1 - p2, p3 - p1 - p2   # (real, imag) contribution

    # Peel i == 0: initializes the VMEM-resident output block without a
    # separate zero-fill + reload pass.
    r0, i0 = gauss(0)
    or_ref[...] = r0
    oi_ref[...] = i0

    def body(i, carry):
        r, im = gauss(i)
        or_ref[...] += r               # accumulate in VMEM output block
        oi_ref[...] += im
        return carry

    jax.lax.fori_loop(1, ci, body, 0, unroll=True)


def _compl_mix_corners(xr, xi, wr, wi, *, tb):
    """Fused two-corner complex channel mix.

    xr/xi : (2, Ci, B, Mp) f32     wr/wi : (2, Ci, Co, Mp) f32
    returns (o_r, o_i), each (2, B, Co, Mp) f32
    """
    _, ci, b_total, mp = xr.shape
    co = wr.shape[2]
    nb = b_total // tb

    out_sds = jax.ShapeDtypeStruct((2, b_total, co, mp), jnp.float32)

    x_spec = pl.BlockSpec((None, ci, tb, mp), lambda c, b: (c, 0, b, 0))
    w_spec = pl.BlockSpec((None, ci, co, mp), lambda c, b: (c, 0, 0, 0))
    o_spec = pl.BlockSpec((None, tb, co, mp), lambda c, b: (c, b, 0, 0))

    # 3 mul + 5 add per (corner, b, i, o, m) -> ~8 flops.
    flops = 2 * b_total * ci * co * mp * 8
    bytes_accessed = 4 * (xr.size + xi.size + wr.size + wi.size
                          + 2 * 2 * b_total * co * mp)

    return pl.pallas_call(
        _spectral_mix_kernel,
        out_shape=(out_sds, out_sds),
        grid_spec=pltpu.PrefetchScalarGridSpec(
            num_scalar_prefetch=0,
            grid=(2, nb),
            in_specs=[x_spec, x_spec, w_spec, w_spec],
            out_specs=(o_spec, o_spec),
        ),
        compiler_params=pltpu.CompilerParams(
            dimension_semantics=("parallel", "parallel")),
        cost_estimate=pl.CostEstimate(
            flops=flops, transcendentals=0, bytes_accessed=bytes_accessed),
    )(xr, xi, wr, wi)


def spectral_conv2d(x, weights1, weights2, modes1, modes2):
    """Forward pass of SpectralConv2d.

    x: (B, Ci, H, W) float32
    weights1, weights2: (Ci, Co, modes1, modes2) complex64
    returns: (B, Co, H, W) float32
    """
    B, Ci, H, W = x.shape
    Co = weights1.shape[1]
    Wf = W // 2 + 1
    M = modes1 * modes2
    Mp = pl.cdiv(M, 128) * 128            # lane-dense trailing axis
    tb = 8 if B % 8 == 0 else B           # batch tile (divides B, 8-aligned when possible)

    x_ft = jnp.fft.rfft2(x)               # (B, Ci, H, Wf) complex64

    # Stack both frequency corners and flatten modes onto the lane axis:
    # x_c -> (2, Ci, B, M), w_c -> (2, Ci, Co, M).
    x_c = jnp.stack(
        [x_ft[:, :, :modes1, :modes2], x_ft[:, :, H - modes1:, :modes2]], axis=0)
    x_c = jnp.transpose(x_c, (0, 2, 1, 3, 4)).reshape(2, Ci, B, M)
    w_c = jnp.stack([weights1, weights2], axis=0).reshape(2, Ci, Co, M)

    # TODO(synk): the real/imag split + final lax.complex are extra XLA passes over
    # the (small) frequency corners; an interleaved complex64<->f32 bitcast path
    # inside the kernel would remove them.
    xr = jnp.real(x_c).astype(jnp.float32)
    xi = jnp.imag(x_c).astype(jnp.float32)
    wr = jnp.real(w_c).astype(jnp.float32)
    wi = jnp.imag(w_c).astype(jnp.float32)

    if Mp != M:
        pad = ((0, 0), (0, 0), (0, 0), (0, Mp - M))
        xr, xi, wr, wi = (jnp.pad(a, pad) for a in (xr, xi, wr, wi))

    o_r, o_i = _compl_mix_corners(xr, xi, wr, wi, tb=tb)

    out_c = jax.lax.complex(o_r[..., :M], o_i[..., :M])
    out_c = out_c.reshape(2, B, Co, modes1, modes2)

    # TODO(synk): writing the corners straight into out_ft from the kernel would
    # drop these two dynamic-update-slice passes; kept in XLA for simplicity.
    out_ft = jnp.zeros((B, Co, H, Wf), jnp.complex64)
    out_ft = out_ft.at[:, :, :modes1, :modes2].set(out_c[0])
    out_ft = out_ft.at[:, :, H - modes1:, :modes2].set(out_c[1])

    # TODO(synk): rfft2/irfft2 have no Pallas equivalent; they stay in XLA.
    return jnp.fft.irfft2(out_ft, s=(H, W)).astype(jnp.float32)


def _reference_spectral_conv2d(x, weights1, weights2, modes1, modes2):
    """Pure-JAX reference mirroring the PyTorch forward exactly."""
    B, Ci, H, W = x.shape
    Co = weights1.shape[1]
    x_ft = jnp.fft.rfft2(x)
    out_ft = jnp.zeros((B, Co, H, W // 2 + 1), jnp.complex64)
    out_ft = out_ft.at[:, :, :modes1, :modes2].set(
        jnp.einsum('bixy,ioxy->boxy', x_ft[:, :, :modes1, :modes2], weights1))
    out_ft = out_ft.at[:, :, H - modes1:, :modes2].set(
        jnp.einsum('bixy,ioxy->boxy', x_ft[:, :, H - modes1:, :modes2], weights2))
    return jnp.fft.irfft2(out_ft, s=(H, W)).astype(jnp.float32)


if __name__ == "__main__":
    # Module hyperparameters (small shapes).
    in_channels, out_channels = 4, 4
    modes1, modes2 = 4, 4
    B, H, W = 2, 16, 16

    key = jax.random.PRNGKey(0)
    kx, kw1r, kw1i, kw2r, kw2i = jax.random.split(key, 5)

    scale = 1.0 / (in_channels * out_channels)
    wshape = (in_channels, out_channels, modes1, modes2)
    # torch.rand(..., dtype=cfloat) -> real & imag each uniform in [0, 1).
    weights1 = scale * jax.lax.complex(
        jax.random.uniform(kw1r, wshape, jnp.float32),
        jax.random.uniform(kw1i, wshape, jnp.float32))
    weights2 = scale * jax.lax.complex(
        jax.random.uniform(kw2r, wshape, jnp.float32),
        jax.random.uniform(kw2i, wshape, jnp.float32))

    x = jax.random.normal(kx, (B, in_channels, H, W), jnp.float32)

    fwd = jax.jit(spectral_conv2d, static_argnums=(3, 4))
    out = jax.block_until_ready(fwd(x, weights1, weights2, modes1, modes2))

    ref = jax.block_until_ready(
        _reference_spectral_conv2d(x, weights1, weights2, modes1, modes2))

    assert out.shape == (B, out_channels, H, W), out.shape
    err = float(jnp.max(jnp.abs(out - ref)))
    assert jnp.allclose(out, ref, atol=1e-5, rtol=1e-5), err

    print("KERNEL_OK")
</pallas_src>

<mosaic_0001>
module attributes {stable_mosaic.version = 11 : i64} {
  func.func @_spectral_mix_kernel(%arg0: i32, %arg1: i32, %arg2: memref<1x4x2x128xf32, #tpu.memory_space<vmem>>, %arg3: memref<1x4x2x128xf32, #tpu.memory_space<vmem>>, %arg4: memref<1x4x4x128xf32, #tpu.memory_space<vmem>>, %arg5: memref<1x4x4x128xf32, #tpu.memory_space<vmem>>, %arg6: memref<1x2x4x128xf32, #tpu.memory_space<vmem>>, %arg7: memref<1x2x4x128xf32, #tpu.memory_space<vmem>>) attributes {dimension_semantics = [#tpu.dimension_semantics<parallel>, #tpu.dimension_semantics<parallel>], iteration_bounds = array<i64: 2, 1>, scalar_prefetch = 0 : i64, scratch_operands = 0 : i64, tpu.core_type = #tpu.core_type<tc>, window_params = [{transform_indices = @transform_0, window_bounds = array<i64: 1, 4, 2, 128>}, {transform_indices = @transform_1, window_bounds = array<i64: 1, 4, 2, 128>}, {transform_indices = @transform_2, window_bounds = array<i64: 1, 4, 4, 128>}, {transform_indices = @transform_3, window_bounds = array<i64: 1, 4, 4, 128>}, {transform_indices = @transform_4, window_bounds = array<i64: 1, 2, 4, 128>}, {transform_indices = @transform_5, window_bounds = array<i64: 1, 2, 4, 128>}]} {
    %c0 = arith.constant 0 : index
    %c0_0 = arith.constant 0 : index
    %c0_1 = arith.constant 0 : index
    %c0_2 = arith.constant 0 : index
    %0 = vector.load %arg2[%c0, %c0_0, %c0_1, %c0_2] : memref<1x4x2x128xf32, #tpu.memory_space<vmem>>, vector<1x1x2x128xf32>
    %1 = vector.shape_cast %0 : vector<1x1x2x128xf32> to vector<2x128xf32>
    %2 = vector.shape_cast %1 : vector<2x128xf32> to vector<2x1x128xf32>
    %c0_3 = arith.constant 0 : index
    %c0_4 = arith.constant 0 : index
    %c0_5 = arith.constant 0 : index
    %c0_6 = arith.constant 0 : index
    %3 = vector.load %arg3[%c0_3, %c0_4, %c0_5, %c0_6] : memref<1x4x2x128xf32, #tpu.memory_space<vmem>>, vector<1x1x2x128xf32>
    %4 = vector.shape_cast %3 : vector<1x1x2x128xf32> to vector<2x128xf32>
    %5 = vector.shape_cast %4 : vector<2x128xf32> to vector<2x1x128xf32>
    %c0_7 = arith.constant 0 : index
    %c0_8 = arith.constant 0 : index
    %c0_9 = arith.constant 0 : index
    %c0_10 = arith.constant 0 : index
    %6 = vector.load %arg4[%c0_7, %c0_8, %c0_9, %c0_10] : memref<1x4x4x128xf32, #tpu.memory_space<vmem>>, vector<1x1x4x128xf32>
    %7 = vector.shape_cast %6 : vector<1x1x4x128xf32> to vector<4x128xf32>
    %8 = vector.shape_cast %7 : vector<4x128xf32> to vector<1x4x128xf32>
    %c0_11 = arith.constant 0 : index
    %c0_12 = arith.constant 0 : index
    %c0_13 = arith.constant 0 : index
    %c0_14 = arith.constant 0 : index
    %9 = vector.load %arg5[%c0_11, %c0_12, %c0_13, %c0_14] : memref<1x4x4x128xf32, #tpu.memory_space<vmem>>, vector<1x1x4x128xf32>
    %10 = vector.shape_cast %9 : vector<1x1x4x128xf32> to vector<4x128xf32>
    %11 = vector.shape_cast %10 : vector<4x128xf32> to vector<1x4x128xf32>
    %12 = vector.broadcast %2 : vector<2x1x128xf32> to vector<2x4x128xf32>
    %13 = vector.broadcast %8 : vector<1x4x128xf32> to vector<2x4x128xf32>
    %14 = arith.mulf %12, %13 : vector<2x4x128xf32>
    %15 = vector.broadcast %5 : vector<2x1x128xf32> to vector<2x4x128xf32>
    %16 = vector.broadcast %11 : vector<1x4x128xf32> to vector<2x4x128xf32>
    %17 = arith.mulf %15, %16 : vector<2x4x128xf32>
    %18 = arith.addf %2, %5 : vector<2x1x128xf32>
    %19 = arith.addf %8, %11 : vector<1x4x128xf32>
    %20 = vector.broadcast %18 : vector<2x1x128xf32> to vector<2x4x128xf32>
    %21 = vector.broadcast %19 : vector<1x4x128xf32> to vector<2x4x128xf32>
    %22 = arith.mulf %20, %21 : vector<2x4x128xf32>
    %23 = arith.subf %14, %17 : vector<2x4x128xf32>
    %24 = arith.subf %22, %14 : vector<2x4x128xf32>
    %25 = arith.subf %24, %17 : vector<2x4x128xf32>
    %c0_15 = arith.constant 0 : index
    %c0_16 = arith.constant 0 : index
    %c0_17 = arith.constant 0 : index
    %c0_18 = arith.constant 0 : index
    %26 = vector.load %arg6[%c0_15, %c0_16, %c0_17, %c0_18] : memref<1x2x4x128xf32, #tpu.memory_space<vmem>>, vector<1x2x4x128xf32>
    %27 = vector.shape_cast %26 : vector<1x2x4x128xf32> to vector<2x4x128xf32>
    %28 = vector.shape_cast %23 : vector<2x4x128xf32> to vector<1x2x4x128xf32>
    tpu.vector_store %arg6[%c0_15, %c0_16, %c0_17, %c0_18], %28 {strides = array<i32>} : memref<1x2x4x128xf32, #tpu.memory_space<vmem>>, vector<1x2x4x128xf32>,
    %c0_19 = arith.constant 0 : index
    %c0_20 = arith.constant 0 : index
    %c0_21 = arith.constant 0 : index
    %c0_22 = arith.constant 0 : index
    %29 = vector.load %arg7[%c0_19, %c0_20, %c0_21, %c0_22] : memref<1x2x4x128xf32, #tpu.memory_space<vmem>>, vector<1x2x4x128xf32>
    %30 = vector.shape_cast %29 : vector<1x2x4x128xf32> to vector<2x4x128xf32>
    %31 = vector.shape_cast %25 : vector<2x4x128xf32> to vector<1x2x4x128xf32>
    tpu.vector_store %arg7[%c0_19, %c0_20, %c0_21, %c0_22], %31 {strides = array<i32>} : memref<1x2x4x128xf32, #tpu.memory_space<vmem>>, vector<1x2x4x128xf32>,
    %c1_i32 = arith.constant 1 : i32
    %c0_23 = arith.constant 0 : index
    %32 = arith.index_cast %c1_i32 : i32 to index
    %c0_24 = arith.constant 0 : index
    %c0_25 = arith.constant 0 : index
    %33 = vector.load %arg2[%c0_23, %32, %c0_24, %c0_25] : memref<1x4x2x128xf32, #tpu.memory_space<vmem>>, vector<1x1x2x128xf32>
    %34 = vector.shape_cast %33 : vector<1x1x2x128xf32> to vector<2x128xf32>
    %35 = vector.shape_cast %34 : vector<2x128xf32> to vector<2x1x128xf32>
    %c0_26 = arith.constant 0 : index
    %36 = arith.index_cast %c1_i32 : i32 to index
    %c0_27 = arith.constant 0 : index
    %c0_28 = arith.constant 0 : index
    %37 = vector.load %arg3[%c0_26, %36, %c0_27, %c0_28] : memref<1x4x2x128xf32, #tpu.memory_space<vmem>>, vector<1x1x2x128xf32>
    %38 = vector.shape_cast %37 : vector<1x1x2x128xf32> to vector<2x128xf32>
    %39 = vector.shape_cast %38 : vector<2x128xf32> to vector<2x1x128xf32>
    %c0_29 = arith.constant 0 : index
    %40 = arith.index_cast %c1_i32 : i32 to index
    %c0_30 = arith.constant 0 : index
    %c0_31 = arith.constant 0 : index
    %41 = vector.load %arg4[%c0_29, %40, %c0_30, %c0_31] : memref<1x4x4x128xf32, #tpu.memory_space<vmem>>, vector<1x1x4x128xf32>
    %42 = vector.shape_cast %41 : vector<1x1x4x128xf32> to vector<4x128xf32>
    %43 = vector.shape_cast %42 : vector<4x128xf32> to vector<1x4x128xf32>
    %c0_32 = arith.constant 0 : index
    %44 = arith.index_cast %c1_i32 : i32 to index
    %c0_33 = arith.constant 0 : index
    %c0_34 = arith.constant 0 : index
    %45 = vector.load %arg5[%c0_32, %44, %c0_33, %c0_34] : memref<1x4x4x128xf32, #tpu.memory_space<vmem>>, vector<1x1x4x128xf32>
    %46 = vector.shape_cast %45 : vector<1x1x4x128xf32> to vector<4x128xf32>
    %47 = vector.shape_cast %46 : vector<4x128xf32> to vector<1x4x128xf32>
    %48 = vector.broadcast %35 : vector<2x1x128xf32> to vector<2x4x128xf32>
    %49 = vector.broadcast %43 : vector<1x4x128xf32> to vector<2x4x128xf32>
    %50 = arith.mulf %48, %49 : vector<2x4x128xf32>
    %51 = vector.broadcast %39 : vector<2x1x128xf32> to vector<2x4x128xf32>
    %52 = vector.broadcast %47 : vector<1x4x128xf32> to vector<2x4x128xf32>
    %53 = arith.mulf %51, %52 : vector<2x4x128xf32>
    %54 = arith.addf %35, %39 : vector<2x1x128xf32>
    %55 = arith.addf %43, %47 : vector<1x4x128xf32>
    %56 = vector.broadcast %54 : vector<2x1x128xf32> to vector<2x4x128xf32>
    %57 = vector.broadcast %55 : vector<1x4x128xf32> to vector<2x4x128xf32>
    %58 = arith.mulf %56, %57 : vector<2x4x128xf32>
    %59 = arith.subf %50, %53 : vector<2x4x128xf32>
    %60 = arith.subf %58, %50 : vector<2x4x128xf32>
    %61 = arith.subf %60, %53 : vector<2x4x128xf32>
    %c0_35 = arith.constant 0 : index
    %c0_36 = arith.constant 0 : index
    %c0_37 = arith.constant 0 : index
    %c0_38 = arith.constant 0 : index
    %62 = vector.load %arg6[%c0_35, %c0_36, %c0_37, %c0_38] : memref<1x2x4x128xf32, #tpu.memory_space<vmem>>, vector<1x2x4x128xf32>
    %63 = vector.shape_cast %62 : vector<1x2x4x128xf32> to vector<2x4x128xf32>
    %64 = arith.addf %63, %59 : vector<2x4x128xf32>
    %c0_39 = arith.constant 0 : index
    %c0_40 = arith.constant 0 : index
    %c0_41 = arith.constant 0 : index
    %c0_42 = arith.constant 0 : index
    %65 = vector.load %arg6[%c0_39, %c0_40, %c0_41, %c0_42] : memref<1x2x4x128xf32, #tpu.memory_space<vmem>>, vector<1x2x4x128xf32>
    %66 = vector.shape_cast %65 : vector<1x2x4x128xf32> to vector<2x4x128xf32>
    %67 = vector.shape_cast %64 : vector<2x4x128xf32> to vector<1x2x4x128xf32>
    tpu.vector_store %arg6[%c0_39, %c0_40, %c0_41, %c0_42], %67 {strides = array<i32>} : memref<1x2x4x128xf32, #tpu.memory_space<vmem>>, vector<1x2x4x128xf32>,
    %c0_43 = arith.constant 0 : index
    %c0_44 = arith.constant 0 : index
    %c0_45 = arith.constant 0 : index
    %c0_46 = arith.constant 0 : index
    %68 = vector.load %arg7[%c0_43, %c0_44, %c0_45, %c0_46] : memref<1x2x4x128xf32, #tpu.memory_space<vmem>>, vector<1x2x4x128xf32>
    %69 = vector.shape_cast %68 : vector<1x2x4x128xf32> to vector<2x4x128xf32>
    %70 = arith.addf %69, %61 : vector<2x4x128xf32>
    %c0_47 = arith.constant 0 : index
    %c0_48 = arith.constant 0 : index
    %c0_49 = arith.constant 0 : index
    %c0_50 = arith.constant 0 : index
    %71 = vector.load %arg7[%c0_47, %c0_48, %c0_49, %c0_50] : memref<1x2x4x128xf32, #tpu.memory_space<vmem>>, vector<1x2x4x128xf32>
    %72 = vector.shape_cast %71 : vector<1x2x4x128xf32> to vector<2x4x128xf32>
    %73 = vector.shape_cast %70 : vector<2x4x128xf32> to vector<1x2x4x128xf32>
    tpu.vector_store %arg7[%c0_47, %c0_48, %c0_49, %c0_50], %73 {strides = array<i32>} : memref<1x2x4x128xf32, #tpu.memory_space<vmem>>, vector<1x2x4x128xf32>,
    %c2_i32 = arith.constant 2 : i32
    %c0_51 = arith.constant 0 : index
    %74 = arith.index_cast %c2_i32 : i32 to index
    %c0_52 = arith.constant 0 : index
    %c0_53 = arith.constant 0 : index
    %75 = vector.load %arg2[%c0_51, %74, %c0_52, %c0_53] : memref<1x4x2x128xf32, #tpu.memory_space<vmem>>, vector<1x1x2x128xf32>
    %76 = vector.shape_cast %75 : vector<1x1x2x128xf32> to vector<2x128xf32>
    %77 = vector.shape_cast %76 : vector<2x128xf32> to vector<2x1x128xf32>
    %c0_54 = arith.constant 0 : index
    %78 = arith.index_cast %c2_i32 : i32 to index
    %c0_55 = arith.constant 0 : index
    %c0_56 = arith.constant 0 : index
    %79 = vector.load %arg3[%c0_54, %78, %c0_55, %c0_56] : memref<1x4x2x128xf32, #tpu.memory_space<vmem>>, vector<1x1x2x128xf32>
    %80 = vector.shape_cast %79 : vector<1x1x2x128xf32> to vector<2x128xf32>
    %81 = vector.shape_cast %80 : vector<2x128xf32> to vector<2x1x128xf32>
    %c0_57 = arith.constant 0 : index
    %82 = arith.index_cast %c2_i32 : i32 to index
    %c0_58 = arith.constant 0 : index
    %c0_59 = arith.constant 0 : index
    %83 = vector.load %arg4[%c0_57, %82, %c0_58, %c0_59] : memref<1x4x4x128xf32, #tpu.memory_space<vmem>>, vector<1x1x4x128xf32>
    %84 = vector.shape_cast %83 : vector<1x1x4x128xf32> to vector<4x128xf32>
    %85 = vector.shape_cast %84 : vector<4x128xf32> to vector<1x4x128xf32>
    %c0_60 = arith.constant 0 : index
    %86 = arith.index_cast %c2_i32 : i32 to index
    %c0_61 = arith.constant 0 : index
    %c0_62 = arith.constant 0 : index
    %87 = vector.load %arg5[%c0_60, %86, %c0_61, %c0_62] : memref<1x4x4x128xf32, #tpu.memory_space<vmem>>, vector<1x1x4x128xf32>
    %88 = vector.shape_cast %87 : vector<1x1x4x128xf32> to vector<4x128xf32>
    %89 = vector.shape_cast %88 : vector<4x128xf32> to vector<1x4x128xf32>
    %90 = vector.broadcast %77 : vector<2x1x128xf32> to vector<2x4x128xf32>
    %91 = vector.broadcast %85 : vector<1x4x128xf32> to vector<2x4x128xf32>
    %92 = arith.mulf %90, %91 : vector<2x4x128xf32>
    %93 = vector.broadcast %81 : vector<2x1x128xf32> to vector<2x4x128xf32>
    %94 = vector.broadcast %89 : vector<1x4x128xf32> to vector<2x4x128xf32>
    %95 = arith.mulf %93, %94 : vector<2x4x128xf32>
    %96 = arith.addf %77, %81 : vector<2x1x128xf32>
    %97 = arith.addf %85, %89 : vector<1x4x128xf32>
    %98 = vector.broadcast %96 : vector<2x1x128xf32> to vector<2x4x128xf32>
    %99 = vector.broadcast %97 : vector<1x4x128xf32> to vector<2x4x128xf32>
    %100 = arith.mulf %98, %99 : vector<2x4x128xf32>
    %101 = arith.subf %92, %95 : vector<2x4x128xf32>
    %102 = arith.subf %100, %92 : vector<2x4x128xf32>
    %103 = arith.subf %102, %95 : vector<2x4x128xf32>
    %c0_63 = arith.constant 0 : index
    %c0_64 = arith.constant 0 : index
    %c0_65 = arith.constant 0 : index
    %c0_66 = arith.constant 0 : index
    %104 = vector.load %arg6[%c0_63, %c0_64, %c0_65, %c0_66] : memref<1x2x4x128xf32, #tpu.memory_space<vmem>>, vector<1x2x4x128xf32>
    %105 = vector.shape_cast %104 : vector<1x2x4x128xf32> to vector<2x4x128xf32>
    %106 = arith.addf %105, %101 : vector<2x4x128xf32>
    %c0_67 = arith.constant 0 : index
    %c0_68 = arith.constant 0 : index
    %c0_69 = arith.constant 0 : index
    %c0_70 = arith.constant 0 : index
    %107 = vector.load %arg6[%c0_67, %c0_68, %c0_69, %c0_70] : memref<1x2x4x128xf32, #tpu.memory_space<vmem>>, vector<1x2x4x128xf32>
    %108 = vector.shape_cast %107 : vector<1x2x4x128xf32> to vector<2x4x128xf32>
    %109 = vector.shape_cast %106 : vector<2x4x128xf32> to vector<1x2x4x128xf32>
    tpu.vector_store %arg6[%c0_67, %c0_68, %c0_69, %c0_70], %109 {strides = array<i32>} : memref<1x2x4x128xf32, #tpu.memory_space<vmem>>, vector<1x2x4x128xf32>,
    %c0_71 = arith.constant 0 : index
    %c0_72 = arith.constant 0 : index
    %c0_73 = arith.constant 0 : index
    %c0_74 = arith.constant 0 : index
    %110 = vector.load %arg7[%c0_71, %c0_72, %c0_73, %c0_74] : memref<1x2x4x128xf32, #tpu.memory_space<vmem>>, vector<1x2x4x128xf32>
    %111 = vector.shape_cast %110 : vector<1x2x4x128xf32> to vector<2x4x128xf32>
    %112 = arith.addf %111, %103 : vector<2x4x128xf32>
    %c0_75 = arith.constant 0 : index
    %c0_76 = arith.constant 0 : index
    %c0_77 = arith.constant 0 : index
    %c0_78 = arith.constant 0 : index
    %113 = vector.load %arg7[%c0_75, %c0_76, %c0_77, %c0_78] : memref<1x2x4x128xf32, #tpu.memory_space<vmem>>, vector<1x2x4x128xf32>
    %114 = vector.shape_cast %113 : vector<1x2x4x128xf32> to vector<2x4x128xf32>
    %115 = vector.shape_cast %112 : vector<2x4x128xf32> to vector<1x2x4x128xf32>
    tpu.vector_store %arg7[%c0_75, %c0_76, %c0_77, %c0_78], %115 {strides = array<i32>} : memref<1x2x4x128xf32, #tpu.memory_space<vmem>>, vector<1x2x4x128xf32>,
    %c3_i32 = arith.constant 3 : i32
    %c0_79 = arith.constant 0 : index
    %116 = arith.index_cast %c3_i32 : i32 to index
    %c0_80 = arith.constant 0 : index
    %c0_81 = arith.constant 0 : index
    %117 = vector.load %arg2[%c0_79, %116, %c0_80, %c0_81] : memref<1x4x2x128xf32, #tpu.memory_space<vmem>>, vector<1x1x2x128xf32>
    %118 = vector.shape_cast %117 : vector<1x1x2x128xf32> to vector<2x128xf32>
    %119 = vector.shape_cast %118 : vector<2x128xf32> to vector<2x1x128xf32>
    %c0_82 = arith.constant 0 : index
    %120 = arith.index_cast %c3_i32 : i32 to index
    %c0_83 = arith.constant 0 : index
    %c0_84 = arith.constant 0 : index
    %121 = vector.load %arg3[%c0_82, %120, %c0_83, %c0_84] : memref<1x4x2x128xf32, #tpu.memory_space<vmem>>, vector<1x1x2x128xf32>
    %122 = vector.shape_cast %121 : vector<1x1x2x128xf32> to vector<2x128xf32>
    %123 = vector.shape_cast %122 : vector<2x128xf32> to vector<2x1x128xf32>
    %c0_85 = arith.constant 0 : index
    %124 = arith.index_cast %c3_i32 : i32 to index
    %c0_86 = arith.constant 0 : index
    %c0_87 = arith.constant 0 : index
    %125 = vector.load %arg4[%c0_85, %124, %c0_86, %c0_87] : memref<1x4x4x128xf32, #tpu.memory_space<vmem>>, vector<1x1x4x128xf32>
    %126 = vector.shape_cast %125 : vector<1x1x4x128xf32> to vector<4x128xf32>
    %127 = vector.shape_cast %126 : vector<4x128xf32> to vector<1x4x128xf32>
    %c0_88 = arith.constant 0 : index
    %128 = arith.index_cast %c3_i32 : i32 to index
    %c0_89 = arith.constant 0 : index
    %c0_90 = arith.constant 0 : index
    %129 = vector.load %arg5[%c0_88, %128, %c0_89, %c0_90] : memref<1x4x4x128xf32, #tpu.memory_space<vmem>>, vector<1x1x4x128xf32>
    %130 = vector.shape_cast %129 : vector<1x1x4x128xf32> to vector<4x128xf32>
    %131 = vector.shape_cast %130 : vector<4x128xf32> to vector<1x4x128xf32>
    %132 = vector.broadcast %119 : vector<2x1x128xf32> to vector<2x4x128xf32>
    %133 = vector.broadcast %127 : vector<1x4x128xf32> to vector<2x4x128xf32>
    %134 = arith.mulf %132, %133 : vector<2x4x128xf32>
    %135 = vector.broadcast %123 : vector<2x1x128xf32> to vector<2x4x128xf32>
    %136 = vector.broadcast %131 : vector<1x4x128xf32> to vector<2x4x128xf32>
    %137 = arith.mulf %135, %136 : vector<2x4x128xf32>
    %138 = arith.addf %119, %123 : vector<2x1x128xf32>
    %139 = arith.addf %127, %131 : vector<1x4x128xf32>
    %140 = vector.broadcast %138 : vector<2x1x128xf32> to vector<2x4x128xf32>
    %141 = vector.broadcast %139 : vector<1x4x128xf32> to vector<2x4x128xf32>
    %142 = arith.mulf %140, %141 : vector<2x4x128xf32>
    %143 = arith.subf %134, %137 : vector<2x4x128xf32>
    %144 = arith.subf %142, %134 : vector<2x4x128xf32>
    %145 = arith.subf %144, %137 : vector<2x4x128xf32>
    %c0_91 = arith.constant 0 : index
    %c0_92 = arith.constant 0 : index
    %c0_93 = arith.constant 0 : index
    %c0_94 = arith.constant 0 : index
    %146 = vector.load %arg6[%c0_91, %c0_92, %c0_93, %c0_94] : memref<1x2x4x128xf32, #tpu.memory_space<vmem>>, vector<1x2x4x128xf32>
    %147 = vector.shape_cast %146 : vector<1x2x4x128xf32> to vector<2x4x128xf32>
    %148 = arith.addf %147, %143 : vector<2x4x128xf32>
    %c0_95 = arith.constant 0 : index
    %c0_96 = arith.constant 0 : index
    %c0_97 = arith.constant 0 : index
    %c0_98 = arith.constant 0 : index
    %149 = vector.load %arg6[%c0_95, %c0_96, %c0_97, %c0_98] : memref<1x2x4x128xf32, #tpu.memory_space<vmem>>, vector<1x2x4x128xf32>
    %150 = vector.shape_cast %149 : vector<1x2x4x128xf32> to vector<2x4x128xf32>
    %151 = vector.shape_cast %148 : vector<2x4x128xf32> to vector<1x2x4x128xf32>
    tpu.vector_store %arg6[%c0_95, %c0_96, %c0_97, %c0_98], %151 {strides = array<i32>} : memref<1x2x4x128xf32, #tpu.memory_space<vmem>>, vector<1x2x4x128xf32>,
    %c0_99 = arith.constant 0 : index
    %c0_100 = arith.constant 0 : index
    %c0_101 = arith.constant 0 : index
    %c0_102 = arith.constant 0 : index
    %152 = vector.load %arg7[%c0_99, %c0_100, %c0_101, %c0_102] : memref<1x2x4x128xf32, #tpu.memory_space<vmem>>, vector<1x2x4x128xf32>
    %153 = vector.shape_cast %152 : vector<1x2x4x128xf32> to vector<2x4x128xf32>
    %154 = arith.addf %153, %145 : vector<2x4x128xf32>
    %c0_103 = arith.constant 0 : index
    %c0_104 = arith.constant 0 : index
    %c0_105 = arith.constant 0 : index
    %c0_106 = arith.constant 0 : index
    %155 = vector.load %arg7[%c0_103, %c0_104, %c0_105, %c0_106] : memref<1x2x4x128xf32, #tpu.memory_space<vmem>>, vector<1x2x4x128xf32>
    %156 = vector.shape_cast %155 : vector<1x2x4x128xf32> to vector<2x4x128xf32>
    %157 = vector.shape_cast %154 : vector<2x4x128xf32> to vector<1x2x4x128xf32>
    tpu.vector_store %arg7[%c0_103, %c0_104, %c0_105, %c0_106], %157 {strides = array<i32>} : memref<1x2x4x128xf32, #tpu.memory_space<vmem>>, vector<1x2x4x128xf32>,
    %c3_i32_107 = arith.constant 3 : i32
    return
  }
  func.func @transform_0(%arg0: i32, %arg1: i32) -> (i32, i32, i32, i32) {
    %c0_i32 = arith.constant 0 : i32
    %c0_i32_0 = arith.constant 0 : i32
    %c0_i32_1 = arith.constant 0 : i32
    return %arg0, %c0_i32, %arg1, %c0_i32_0 : i32, i32, i32, i32
  }
  func.func @transform_1(%arg0: i32, %arg1: i32) -> (i32, i32, i32, i32) {
    %c0_i32 = arith.constant 0 : i32
    %c0_i32_0 = arith.constant 0 : i32
    %c0_i32_1 = arith.constant 0 : i32
    return %arg0, %c0_i32, %arg1, %c0_i32_0 : i32, i32, i32, i32
  }
  func.func @transform_2(%arg0: i32, %arg1: i32) -> (i32, i32, i32, i32) {
    %c0_i32 = arith.constant 0 : i32
    %c0_i32_0 = arith.constant 0 : i32
    %c0_i32_1 = arith.constant 0 : i32
    %c0_i32_2 = arith.constant 0 : i32
    return %arg0, %c0_i32, %c0_i32_0, %c0_i32_1 : i32, i32, i32, i32
  }
  func.func @transform_3(%arg0: i32, %arg1: i32) -> (i32, i32, i32, i32) {
    %c0_i32 = arith.constant 0 : i32
    %c0_i32_0 = arith.constant 0 : i32
    %c0_i32_1 = arith.constant 0 : i32
    %c0_i32_2 = arith.constant 0 : i32
    return %arg0, %c0_i32, %c0_i32_0, %c0_i32_1 : i32, i32, i32, i32
  }
  func.func @transform_4(%arg0: i32, %arg1: i32) -> (i32, i32, i32, i32) {
    %c0_i32 = arith.constant 0 : i32
    %c0_i32_0 = arith.constant 0 : i32
    %c0_i32_1 = arith.constant 0 : i32
    return %arg0, %arg1, %c0_i32, %c0_i32_0 : i32, i32, i32, i32
  }
  func.func @transform_5(%arg0: i32, %arg1: i32) -> (i32, i32, i32, i32) {
    %c0_i32 = arith.constant 0 : i32
    %c0_i32_0 = arith.constant 0 : i32
    %c0_i32_1 = arith.constant 0 : i32
    return %arg0, %arg1, %c0_i32, %c0_i32_0 : i32, i32, i32, i32
  }
}

</mosaic_0001>

<bundles_post_ra>
// kernel: custom-call
= control target key start
LH: loop header
LB: loop body
LE: loop exit
PB: predicated region body
PF: predicated region fallthrough
CT: control target
= control target key end

     0   :  { %2 = vsyncpa [#allocation0], 0  ;;  %s61_s0 = inlined_call_operand.hbm [shape: c64[4,4,4,4], index: 0, kind: input, shape index: {}]   ;;  %s62_s1 = inlined_call_operand.vmem [shape: f32[4,4,4,4], index: 1, kind: output, shape index: {}]  }
   0x1   :  { %s3_s8 = sshll.u32 %s62_s1, 4  ;;  %s9_s11 = scalar_lea.hbm %s61_s0, 1024  ;;  %s4_s8 = int_to_ptr.vmem [resolvable:$true] %s3_s8 }
   0x2   :  { %p10_p0 = scmp.ne.s32.totalorder %s61_s0, %s9_s11  ;;  %s11_s16 = scalar_lea.hbm %s61_s0, 2048 }
   0x3   :  { %p12_p1 = scmp.lt.u32.totalorder %s11_s16, %s9_s11  ;;  %p13_p2 = scmp.lt.u32.totalorder %s9_s11, %s61_s0 }
   0x5   :  { %p14_p3 = por %p13_p2, %p12_p1 }
   0x7   :  { %p15_p4 = pnand %p14_p3, %p10_p0 }
   0x9   :  { %18 = shalt.err (!%p15_p4)  }
   0xa   :  { %s19_s1 = scalar_lea.vmem %s4_s8, 1024  ;;  %p24_p6 = scmp.lt.s32.totalorder %s4_s8, %s4_s8 }
   0xb   :  { %p20_p5 = scmp.ne.s32.totalorder %s4_s8, %s19_s1  ;;  %p25_p7 = scmp.lt.s32.totalorder %s19_s1, %s19_s1 }
   0xd   :  { %p26_p8 = por %p25_p7, %p24_p6 }
   0xf   :  { %p27_p9 = pnand %p26_p8, %p20_p5 }
  0x11   :  { %30 = shalt.err (!%p27_p9)  }
  0x12   :  { %6 = dma.hbm_to_vmem [thread:$0]  %s61_s0, 1024, %s4_s8, [#allocation0] }
  0x13   :  { %31 = dma.done.wait [#allocation0], 1024  }
  0x14   :  { %32 = vsyncadd [#allocation0], 4294966272 }
  0x15   :  { %8 = vsyncpa [#allocation0], 1 }

// kernel: custom-call.1
= control target key start
LH: loop header
LB: loop body
LE: loop exit
PB: predicated region body
PF: predicated region fallthrough
CT: control target
= control target key end

     0   :  { %s59_s0 = inlined_call_operand.hbm [shape: c64[4,4,4,4], index: 0, kind: input, shape index: {}]   ;;  %s60_s1 = inlined_call_operand.vmem [shape: f32[4,4,4,4], index: 1, kind: output, shape index: {}]  }
   0x1   :  { %s2_s8 = scalar_lea.hbm %s59_s0, 1024 }
   0x2   :  { %3 = vsyncpa [#allocation0], 0  ;;  %s4_s11 = sshll.u32 %s60_s1, 4  ;;  %s34_s14 = scalar_lea.hbm %s59_s0, 2048  ;;  %s5_s11 = int_to_ptr.vmem [resolvable:$true] %s4_s11 }
   0x3   :  { %p11_p0 = scmp.ne.s32.totalorder %s2_s8, %s34_s14  ;;  %p13_p1 = scmp.lt.u32.totalorder %s2_s8, %s59_s0 }
   0x4   :  { %p14_p2 = scmp.lt.u32.totalorder %s34_s14, %s34_s14  ;;  %p16_p4 = scmp.lt.u32.totalorder %s34_s14, %s2_s8 }
   0x6   :  { %p15_p3 = por %p14_p2, %p13_p1 }
   0x8   :  { %p17_p5 = por %p16_p4, %p15_p3 }
   0xa   :  { %p18_p6 = pnand %p17_p5, %p11_p0 }
   0xc   :  { %21 = shalt.err (!%p18_p6)  }
   0xd   :  { %s22_s17 = scalar_lea.vmem %s5_s11, 1024  ;;  %p27_p8 = scmp.lt.s32.totalorder %s5_s11, %s5_s11 }
   0xe   :  { %p23_p7 = scmp.ne.s32.totalorder %s5_s11, %s22_s17  ;;  %p28_p9 = scmp.lt.s32.totalorder %s22_s17, %s22_s17 }
  0x10   :  { %p29_p10 = por %p28_p9, %p27_p8 }
  0x12   :  { %p30_p11 = pnand %p29_p10, %p23_p7 }
  0x14   :  { %33 = shalt.err (!%p30_p11)  }
  0x15   :  { %7 = dma.hbm_to_vmem [thread:$0]  %s2_s8, 1024, %s5_s11, [#allocation0] }
  0x16   :  { %35 = dma.done.wait [#allocation0], 1024  }
  0x17   :  { %36 = vsyncadd [#allocation0], 4294966272 }
  0x18   :  { %9 = vsyncpa [#allocation0], 1 }

// kernel: reverse.0
= control target key start
LH: loop header
LB: loop body
LE: loop exit
PB: predicated region body
PF: predicated region fallthrough
CT: control target
= control target key end

     0   :  { %v71_v3 = vlaneseq  ;;  %v64_v9 = vld [vmem:[#allocation0 + $0x7] ss:$-1 sm:$0xff]  ;;  %v78_v12 = vld [vmem:[#allocation0 + $0x17] ss:$-1 sm:$0xff]  ;;  %s329_s0 = inlined_call_operand.vmem [shape: f32[2,4,16,7], index: 0, kind: input, shape index: {}]   ;;  %s330_s1 = inlined_call_operand.vmem [shape: f32[2,4,16,7], index: 1, kind: output, shape index: {}]  }
   0x1   :  { %v44_v0 = vld [vmem:[%s329_s0] sm:$0xff]  ;;  %v46_v1 = vld [vmem:[%s329_s0 + $0x8] sm:$0xff]  ;;  %v48_v2 = vld [vmem:[%s329_s0 + $0x10] sm:$0xff]  ;;  %v65_v10 = vrot.slane %v64_v9, 1  ;;  %v79_v14 = vrot.slane %v78_v12, 1 }
   0x2   :  { %45 = vst [vmem:[#allocation0 + $0x8] sm:$0xff] %v44_v0  ;;  %47 = vst [vmem:[#allocation0 + $0x18] sm:$0xff] %v46_v1  ;;  %v50_v4 = vld [vmem:[%s329_s0 + $0x18] sm:$0xff]  ;;  %v52_v5 = vld [vmem:[%s329_s0 + $0x20] sm:$0xff]  ;;  %v72_v11 = vshrl.u32 %v71_v3, 7 }
   0x3   :  { %49 = vst [vmem:[#allocation0 + $0x28] sm:$0xff] %v48_v2  ;;  %v54_v6 = vld [vmem:[%s329_s0 + $0x28] sm:$0xff]  ;;  %51 = vst [vmem:[#allocation0 + $0x38] sm:$0xff] %v50_v4  ;;  %v56_v7 = vld [vmem:[%s329_s0 + $0x30] sm:$0xff] }
   0x4   :  { %53 = vst [vmem:[#allocation0 + $0x48] sm:$0xff] %v52_v5  ;;  %55 = vst [vmem:[#allocation0 + $0x58] sm:$0xff] %v54_v6  ;;  %v58_v8 = vld [vmem:[%s329_s0 + $0x38] sm:$0xff]  ;;  %v92_v13 = vld [vmem:[#allocation0 + $0x27] ss:$-1 sm:$0xff]  ;;  %vm73_vm0 = vcmp.lt.s32.totalorder %v72_v11, 7 }
   0x5   :  { %57 = vst [vmem:[#allocation0 + $0x68] sm:$0xff] %v56_v7  ;;  %59 = vst [vmem:[#allocation0 + $0x78] sm:$0xff] %v58_v8  ;;  %v93_v15 = vrot.slane %v92_v13, 1  ;;  %v106_v16 = vld [vmem:[#allocation0 + $0x37] ss:$-1 sm:$0xff] }
   0x6   :  { %66 = vst [vmem:[#allocation1] sm:$0xff] %v65_v10  ;;  %v107_v17 = vrot.slane %v106_v16, 1  ;;  %v120_v18 = vld [vmem:[#allocation0 + $0x47] ss:$-1 sm:$0xff]  ;;  %v134_v19 = vld [vmem:[#allocation0 + $0x57] ss:$-1 sm:$0xff] }
   0x7   :  { %80 = vst [vmem:[#allocation1 + $0x8] sm:$0xff] %v79_v14  ;;  %94 = vst [vmem:[#allocation1 + $0x10] sm:$0xff] %v93_v15  ;;  %v121_v20 = vrot.slane %v120_v18, 1  ;;  %v135_v21 = vrot.slane %v134_v19, 1  ;;  %v148_v22 = vld [vmem:[#allocation0 + $0x67] ss:$-1 sm:$0xff] }
   0x8   :  { %v162_v23 = vld [vmem:[#allocation0 + $0x77] ss:$-1 sm:$0xff]  ;;  %108 = vst [vmem:[#allocation1 + $0x18] sm:$0xff] %v107_v17  ;;  %v149_v24 = vrot.slane %v148_v22, 1 }
   0x9   :  { %v163_v25 = vrot.slane %v162_v23, 1  ;;  %v69_v26 = vld [vmem:[#allocation0 + $0xf] ss:$-1 sm:$0xff]  ;;  %v83_v27 = vld [vmem:[#allocation0 + $0x1f] ss:$-1 sm:$0xff]  ;;  %122 = vst [vmem:[#allocation1 + $0x20] sm:$0xff] %v121_v20 }
   0xa   :  { %v97_v28 = vld [vmem:[#allocation0 + $0x2f] ss:$-1 sm:$0xff]  ;;  %136 = vst [vmem:[#allocation1 + $0x28] sm:$0xff] %v135_v21  ;;  %v70_v29 = vrot.slane %v69_v26, 1  ;;  %v84_v30 = vrot.slane %v83_v27, 1  ;;  %150 = vst [vmem:[#allocation1 + $0x30] sm:$0xff] %v149_v24 }
   0xb   :  { %v98_v31 = vrot.slane %v97_v28, 1  ;;  %v111_v32 = vld [vmem:[#allocation0 + $0x3f] ss:$-1 sm:$0xff]  ;;  %164 = vst [vmem:[#allocation1 + $0x38] sm:$0xff] %v163_v25  ;;  %v125_v34 = vld [vmem:[#allocation0 + $0x4f] ss:$-1 sm:$0xff] }
   0xc   :  { %v112_v33 = vrot.slane %v111_v32, 1  ;;  %v139_v35 = vld [vmem:[#allocation0 + $0x5f] ss:$-1 sm:$0xff]  ;;  %74 = vst.msk [vmem:[#allocation1] sm:$0xff] %vm73_vm0, %v70_v29  ;;  %88 = vst.msk [vmem:[#allocation1 + $0x8] sm:$0xff] %vm73_vm0, %v84_v30  ;;  %v126_v36 = vrot.slane %v125_v34, 1 }
   0xd   :  { %102 = vst.msk [vmem:[#allocation1 + $0x10] sm:$0xff] %vm73_vm0, %v98_v31  ;;  %v140_v37 = vrot.slane %v139_v35, 1  ;;  %v153_v38 = vld [vmem:[#allocation0 + $0x6f] ss:$-1 sm:$0xff]  ;;  %v167_v39 = vld [vmem:[#allocation0 + $0x7f] ss:$-1 sm:$0xff] }
   0xe   :  { %116 = vst.msk [vmem:[#allocation1 + $0x18] sm:$0xff] %vm73_vm0, %v112_v33  ;;  %v154_v40 = vrot.slane %v153_v38, 1  ;;  %v168_v41 = vrot.slane %v167_v39, 1  ;;  %130 = vst.msk [vmem:[#allocation1 + $0x20] sm:$0xff] %vm73_vm0, %v126_v36 }
   0xf   :  { %144 = vst.msk [vmem:[#allocation1 + $0x28] sm:$0xff] %vm73_vm0, %v140_v37 }
  0x10   :  { %158 = vst.msk [vmem:[#allocation1 + $0x30] sm:$0xff] %vm73_vm0, %v154_v40  ;;  %172 = vst.msk [vmem:[#allocation1 + $0x38] sm:$0xff] %vm73_vm0, %v168_v41 }
  0x13   :  { %v214_v42 = vld [vmem:[#allocation1] sm:$0xff]  ;;  %v216_v43 = vld [vmem:[#allocation1 + $0x8] sm:$0xff] }
  0x14   :  { %v218_v44 = vld [vmem:[#allocation1 + $0x10] sm:$0xff]  ;;  %215 = vst [vmem:[%s330_s1] sm:$0xff] %v214_v42  ;;  %217 = vst [vmem:[%s330_s1 + $0x8] sm:$0xff] %v216_v43 }
  0x15   :  { %219 = vst [vmem:[%s330_s1 + $0x10] sm:$0xff] %v218_v44  ;;  %v220_v45 = vld [vmem:[#allocation1 + $0x18] sm:$0xff]  ;;  %v222_v46 = vld [vmem:[#allocation1 + $0x20] sm:$0xff] }
  0x16   :  { %221 = vst [vmem:[%s330_s1 + $0x18] sm:$0xff] %v220_v45  ;;  %v224_v47 = vld [vmem:[#allocation1 + $0x28] sm:$0xff]  ;;  %223 = vst [vmem:[%s330_s1 + $0x20] sm:$0xff] %v222_v46 }
  0x17   :  { %225 = vst [vmem:[%s330_s1 + $0x28] sm:$0xff] %v224_v47  ;;  %v226_v48 = vld [vmem:[#allocation1 + $0x30] sm:$0xff]  ;;  %v228_v49 = vld [vmem:[#allocation1 + $0x38] sm:$0xff] }
  0x18   :  { %227 = vst [vmem:[%s330_s1 + $0x30] sm:$0xff] %v226_v48  ;;  %229 = vst [vmem:[%s330_s1 + $0x38] sm:$0xff] %v228_v49 }

// kernel: spectral_conv2d.1
= control target key start
LH: loop header
LB: loop body
LE: loop exit
PB: predicated region body
PF: predicated region fallthrough
CT: control target
= control target key end

     0   :  { %s1114_s18 = smov 0   ;;  %s1116_s19 = smov 0   ;;  %s1287_s0 = inlined_call_operand.vmem [shape: f32[2,4,2,128], index: 0, kind: input, shape index: {}]   ;;  %s1288_s1 = inlined_call_operand.vmem [shape: f32[2,4,2,128], index: 1, kind: input, shape index: {}]   ;;  %s1289_s2 = inlined_call_operand.vmem [shape: f32[2,4,4,128], index: 2, kind: input, shape index: {}]   ;;  %s1290_s3 = inlined_call_operand.vmem [shape: f32[2,4,4,128], index: 3, kind: input, shape index: {}]   ;;  %s1291_s4 = inlined_call_operand.vmem [shape: f32[2,2,4,128], index: 4, kind: output, shape index: {0}]   ;;  %s1292_s5 = inlined_call_operand.vmem [shape: f32[2,2,4,128], index: 5, kind: output, shape index: {1}]  }
   0x1   :  { %s1118_s20 = smov 0  }
   0x2 LB: > { %s28_s21 = sadd.s32 1, %s1077_s19  ;;  %p993_p0 = scmp.ge.s32.totalorder %s1081_s20, 1  ;;  %s1081_s20 = sphi %s1118_s20, %s16_s20   ;;  %s1077_s19 = sphi %s1116_s19, %s1294_s19   ;;  %s1073_s18 = sphi %s1114_s18, %s1293_s18  }
   0x3   : > { %p30_p1 = scmp.ge.s32.totalorder %s28_s21, 2  ;;  %p246_p2 = scmp.lt.s32.totalorder %s1081_s20, 3 }
   0x5   : > { %s1296_s21 = smov (%p30_p1, %s28_s21), 0  ;;  %p247_p3 = pnand %p993_p0, %p246_p2 }
   0x6   : > { %p308_p4 = scmp.lt.s32.totalorder (!%p247_p3), %s1073_s18, 1  ;;  %v367_v0 = vlaneseq (!%p247_p3)  ;;  %v1083_v1 = vmov (!%p247_p3), 1966171168  }
   0x7   : > { %250 = sbr.rel (%p247_p3) target bundleno = 64 (0x40), region = 36  ;;  %v365_v2 = vunpack.c.l.s4 (!%p247_p3), %v1083_v1 }
   0x8   : > { %v368_v3 = vshrl.u32 (!%p247_p3), %v367_v0, 7 }
   0x9   : > { %v366_v4 = vunpack.c.0.s8 (!%p247_p3), %v365_v2 }
   0xa   : > { %v1148_v6 = vsub.s32 (!%p247_p3), 0, %v368_v3 }
   0xb   : > { %v1146_v5 = vsub.s32 (!%p247_p3), %v366_v4, %v368_v3 }
   0xe   : > { %s1298_s18 = smov (!%p308_p4, %s1073_s18), 1 }
   0xf   : > { %s1132_s22 = sshll.u32 %s1298_s18, 3  ;;  %s1030_s23 = sshll.u32 %s1298_s18, 4 }
  0x10   : > { %s1138_s26 = scalar_lea.vmem %s1287_s0, %s1132_s22  ;;  %s1144_s29 = scalar_lea.vmem %s1288_s1, %s1132_s22 }
  0x11   : > { %s1153_s7 = scalar_lea.vmem %s1289_s2, %s1030_s23  ;;  %s1158_s10 = scalar_lea.vmem %s1290_s3, %s1030_s23  ;;  %v1006_v7 = vld.sshfl [vmem:[%s1138_s26] sm:$0x11 pattern:$0x75316420] }
  0x12   : > { %v370_v8 = vrot.slane %v1006_v7, %v1146_v5  ;;  %v1007_v9 = vld.sshfl [vmem:[%s1144_s29] sm:$0x11 pattern:$0x75316420]  ;;  %v363_v11 = vcombine.high %v1006_v7, %v1006_v7  ;;  %s1188_s13 = scalar_lea.vmem %s1291_s4, %s1132_s22  ;;  %v1012_v41 = vld [vmem:[%s1153_s7 + $0x4] sm:$0xf]  ;;  %s1207_s16 = scalar_lea.vmem %s1292_s5, %s1132_s22 }
  0x13   : > { %v406_v10 = vld [vmem:[%s1153_s7] sm:$0xf]  ;;  %v396_v12 = vrot.slane %v1007_v9, %v1146_v5  ;;  %v1167_v14 = vld.sshfl [vmem:[%s1138_s26 + $0x4] sm:$0x11 pattern:$0x75316420]  ;;  %v389_v15 = vcombine.high %v1007_v9, %v1007_v9 }
  0x14   : > { %v407_v13 = vld [vmem:[%s1158_s10] sm:$0xf]  ;;  %v411_v16 = vrot.slane %v370_v8, %v1148_v6  ;;  %v1171_v17 = vld.sshfl [vmem:[%s1144_s29 + $0x4] sm:$0x11 pattern:$0x75316420]  ;;  %v377_v18 = vrot.slane %v363_v11, %v1146_v5  ;;  %v586_v23 = vcombine.high %v1167_v14, %v1167_v14  ;;  %v1194_v35 = vrot.slane %v1167_v14, %v1146_v5 }
  0x15   : > { %v423_v19 = vrot.slane %v396_v12, %v1148_v6  ;;  %v403_v20 = vrot.slane %v389_v15, %v1146_v5  ;;  %v432_v21 = vadd.f32 %v396_v12, %v370_v8  ;;  %v434_v22 = vadd.f32 %v407_v13, %v406_v10  ;;  %v1009_v30 = vld.sshfl [vmem:[%s1138_s26 + $0x2] sm:$0x11 pattern:$0x75316420]  ;;  %v1013_v42 = vld [vmem:[%s1158_s10 + $0x4] sm:$0xf] }
  0x16   : > { %v613_v24 = vcombine.high %v1171_v17, %v1171_v17  ;;  %v415_v25 = vrot.slane %v377_v18, %v1148_v6  ;;  %v418_v26 = vmul.f32 %v411_v16, %v406_v10  ;;  %v476_v33 = vrot.slane %v1009_v30, %v1146_v5  ;;  %v1011_v34 = vld.sshfl [vmem:[%s1144_s29 + $0x2] sm:$0x11 pattern:$0x75316420]  ;;  %v1019_v11 = vld [vmem:[%s1158_s10 + $0x8] sm:$0xf] }
  0x17   : > { %v430_v27 = vmul.f32 %v423_v19, %v407_v13  ;;  %v427_v28 = vrot.slane %v403_v20, %v1148_v6  ;;  %v440_v29 = vrot.slane %v432_v21, %v1148_v6  ;;  %v433_v32 = vadd.f32 %v403_v20, %v377_v18  ;;  %v1210_v50 = vld.sshfl [vmem:[%s1138_s26 + $0x6] sm:$0x11 pattern:$0x75316420] }
  0x18   : > { %v419_v31 = vmul.f32 %v415_v25, %v406_v10  ;;  %v503_v39 = vrot.slane %v1011_v34, %v1146_v5  ;;  %v520_v43 = vrot.slane %v476_v33, %v1148_v6  ;;  %v469_v44 = vcombine.high %v1009_v30, %v1009_v30  ;;  %v1023_v3 = vld.sshfl [vmem:[%s1144_s29 + $0x6] sm:$0x11 pattern:$0x75316420]  ;;  %v1018_v10 = vld [vmem:[%s1153_s7 + $0x8] sm:$0xf] }
  0x19   : > { %v449_v36 = vsub.f32 %v418_v26, %v430_v27  ;;  %v431_v37 = vmul.f32 %v427_v28, %v407_v13  ;;  %v447_v38 = vmul.f32 %v440_v29, %v434_v22  ;;  %v444_v40 = vrot.slane %v433_v32, %v1148_v6 }
  0x1a   : > { %v496_v45 = vcombine.high %v1011_v34, %v1011_v34  ;;  %v532_v48 = vrot.slane %v503_v39, %v1148_v6  ;;  %v541_v49 = vadd.f32 %v503_v39, %v476_v33  ;;  %v527_v52 = vmul.f32 %v1012_v41, %v520_v43  ;;  %v1025_v39 = vld [vmem:[%s1158_s10 + $0xc] sm:$0xf] }
  0x1b   : > { %455 = vst [vmem:[%s1188_s13] sm:$0xf] %v449_v36  ;;  %v450_v46 = vsub.f32 %v419_v31, %v431_v37  ;;  %v451_v47 = vsub.f32 %v447_v38, %v418_v26  ;;  %v448_v51 = vmul.f32 %v444_v40, %v434_v22  ;;  %v483_v53 = vrot.slane %v469_v44, %v1146_v5  ;;  %v1024_v38 = vld [vmem:[%s1153_s7 + $0xc] sm:$0xf] }
  0x1c   : > { %v510_v54 = vrot.slane %v496_v45, %v1146_v5  ;;  %v539_v56 = vmul.f32 %v1013_v42, %v532_v48  ;;  %v543_v57 = vadd.f32 %v1013_v42, %v1012_v41  ;;  %v549_v58 = vrot.slane %v541_v49, %v1148_v6 }
  0x1d   : > { %456 = vst [vmem:[%s1188_s13 + $0x4] sm:$0xf] %v450_v46  ;;  %v453_v55 = vsub.f32 %v451_v47, %v430_v27  ;;  %v452_v59 = vsub.f32 %v448_v51, %v419_v31  ;;  %v524_v60 = vrot.slane %v483_v53, %v1148_v6  ;;  %v703_v63 = vcombine.high %v1210_v50, %v1210_v50 }
  0x1e   : > { %v536_v61 = vrot.slane %v510_v54, %v1148_v6  ;;  %v542_v62 = vadd.f32 %v510_v54, %v483_v53  ;;  %v558_v0 = vsub.f32 %v527_v52, %v539_v56  ;;  %v556_v1 = vmul.f32 %v549_v58, %v543_v57 }
  0x1f   : > { %457 = vst [vmem:[%s1207_s16] sm:$0xf] %v453_v55  ;;  %v620_v2 = vrot.slane %v1171_v17, %v1146_v5  ;;  %v454_v4 = vsub.f32 %v452_v59, %v431_v37  ;;  %v528_v7 = vmul.f32 %v1012_v41, %v524_v60  ;;  %v637_v13 = vrot.slane %v1194_v35, %v1148_v6 }
  0x20   : > { %v540_v8 = vmul.f32 %v1013_v42, %v536_v61  ;;  %v553_v9 = vrot.slane %v542_v62, %v1148_v6  ;;  %v560_v12 = vsub.f32 %v556_v1, %v527_v52  ;;  %v600_v15 = vrot.slane %v586_v23, %v1146_v5 }
  0x21   : > { %v649_v14 = vrot.slane %v620_v2, %v1148_v6  ;;  %458 = vst [vmem:[%s1207_s16 + $0x4] sm:$0xf] %v454_v4  ;;  %v627_v20 = vrot.slane %v613_v24, %v1146_v5  ;;  %v658_v21 = vadd.f32 %v620_v2, %v1194_v35  ;;  %v730_v22 = vcombine.high %v1023_v3, %v1023_v3 }
  0x22   : > { %v564_v16 = vld [vmem:[%s1188_s13] sm:$0xf]  ;;  %v559_v18 = vsub.f32 %v528_v7, %v540_v8  ;;  %v557_v19 = vmul.f32 %v553_v9, %v543_v57  ;;  %v562_v26 = vsub.f32 %v560_v12, %v539_v56  ;;  %v641_v27 = vrot.slane %v600_v15, %v1148_v6 }
  0x23   : > { %v566_v25 = vadd.f32 %v564_v16, %v558_v0  ;;  %v653_v29 = vrot.slane %v627_v20, %v1148_v6  ;;  %v660_v30 = vadd.f32 %v1019_v11, %v1018_v10  ;;  %v666_v31 = vrot.slane %v658_v21, %v1148_v6 }
  0x24   : > { %v565_v23 = vld [vmem:[%s1188_s13 + $0x4] sm:$0xf]  ;;  %v561_v28 = vsub.f32 %v557_v19, %v528_v7  ;;  %v644_v24 = vmul.f32 %v1018_v10, %v637_v13  ;;  %v656_v32 = vmul.f32 %v1019_v11, %v649_v14  ;;  %v659_v33 = vadd.f32 %v627_v20, %v600_v15 }
  0x25   : > { %568 = vst [vmem:[%s1188_s13] sm:$0xf] %v566_v25  ;;  %v567_v17 = vadd.f32 %v565_v23, %v559_v18  ;;  %v673_v36 = vmul.f32 %v666_v31, %v660_v30  ;;  %v710_v37 = vrot.slane %v1210_v50, %v1146_v5  ;;  %v657_v41 = vmul.f32 %v1019_v11, %v653_v29 }
  0x26   : > { %v570_v34 = vld [vmem:[%s1207_s16] sm:$0xf]  ;;  %v563_v35 = vsub.f32 %v561_v28, %v540_v8  ;;  %v670_v42 = vrot.slane %v659_v33, %v1148_v6  ;;  %v737_v43 = vrot.slane %v1023_v3, %v1146_v5  ;;  %v645_v44 = vmul.f32 %v1018_v10, %v641_v27 }
  0x27   : > { %569 = vst [vmem:[%s1188_s13 + $0x4] sm:$0xf] %v567_v17  ;;  %v572_v40 = vadd.f32 %v570_v34, %v562_v26  ;;  %v717_v45 = vrot.slane %v703_v63, %v1146_v5  ;;  %v744_v46 = vrot.slane %v730_v22, %v1146_v5  ;;  %v675_v48 = vsub.f32 %v644_v24, %v656_v32 }
  0x28   : > { %v571_v47 = vld [vmem:[%s1207_s16 + $0x4] sm:$0xf]  ;;  %v677_v49 = vsub.f32 %v673_v36, %v644_v24  ;;  %v674_v50 = vmul.f32 %v670_v42, %v660_v30  ;;  %v775_v51 = vadd.f32 %v737_v43, %v710_v37  ;;  %v777_v52 = vadd.f32 %v1025_v39, %v1024_v38 }
  0x29   : > { %574 = vst [vmem:[%s1207_s16] sm:$0xf] %v572_v40  ;;  %v573_v53 = vadd.f32 %v571_v47, %v563_v35  ;;  %v676_v54 = vsub.f32 %v645_v44, %v657_v41  ;;  %v754_v55 = vrot.slane %v710_v37, %v1148_v6  ;;  %v766_v56 = vrot.slane %v737_v43, %v1148_v6 }
  0x2a   : > { %v783_v57 = vrot.slane %v775_v51, %v1148_v6  ;;  %v678_v58 = vsub.f32 %v674_v50, %v645_v44  ;;  %v776_v59 = vadd.f32 %v744_v46, %v717_v45  ;;  %v679_v61 = vsub.f32 %v677_v49, %v656_v32 }
  0x2b   : > { %575 = vst [vmem:[%s1207_s16 + $0x4] sm:$0xf] %v573_v53  ;;  %v770_v62 = vrot.slane %v744_v46, %v1148_v6  ;;  %v758_v0 = vrot.slane %v717_v45, %v1148_v6  ;;  %v761_v3 = vmul.f32 %v1024_v38, %v754_v55  ;;  %v773_v4 = vmul.f32 %v1025_v39, %v766_v56 }
  0x2c   : > { %v681_v5 = vld [vmem:[%s1188_s13] sm:$0xf]  ;;  %v787_v1 = vrot.slane %v776_v59, %v1148_v6  ;;  %v790_v7 = vmul.f32 %v783_v57, %v777_v52  ;;  %v680_v9 = vsub.f32 %v678_v58, %v657_v41 }
  0x2d   : > { %v683_v60 = vadd.f32 %v681_v5, %v675_v48  ;;  %v774_v11 = vmul.f32 %v1025_v39, %v770_v62  ;;  %v762_v12 = vmul.f32 %v1024_v38, %v758_v0  ;;  %v792_v14 = vsub.f32 %v761_v3, %v773_v4 }
  0x2e   : > { %v682_v63 = vld [vmem:[%s1188_s13 + $0x4] sm:$0xf]  ;;  %v791_v13 = vmul.f32 %v787_v1, %v777_v52  ;;  %v794_v15 = vsub.f32 %v790_v7, %v761_v3 }
  0x2f   : > { %685 = vst [vmem:[%s1188_s13] sm:$0xf] %v683_v60  ;;  %v684_v2 = vadd.f32 %v682_v63, %v676_v54  ;;  %v793_v18 = vsub.f32 %v762_v12, %v774_v11 }
  0x30   : > { %v687_v8 = vld [vmem:[%s1207_s16] sm:$0xf]  ;;  %v795_v20 = vsub.f32 %v791_v13, %v762_v12  ;;  %v796_v22 = vsub.f32 %v794_v15, %v773_v4 }
  0x31   : > { %686 = vst [vmem:[%s1188_s13 + $0x4] sm:$0xf] %v684_v2  ;;  %v689_v10 = vadd.f32 %v687_v8, %v679_v61 }
  0x32   : > { %v688_v6 = vld [vmem:[%s1207_s16 + $0x4] sm:$0xf]  ;;  %v797_v23 = vsub.f32 %v795_v20, %v774_v11 }
  0x33   : > { %691 = vst [vmem:[%s1207_s16] sm:$0xf] %v689_v10  ;;  %v690_v16 = vadd.f32 %v688_v6, %v680_v9 }
  0x35   : > { %692 = vst [vmem:[%s1207_s16 + $0x4] sm:$0xf] %v690_v16 }
  0x36   : > { %v798_v19 = vld [vmem:[%s1188_s13] sm:$0xf] }
  0x37   : > { %v800_v21 = vadd.f32 %v798_v19, %v792_v14 }
  0x38   : > { %v799_v25 = vld [vmem:[%s1188_s13 + $0x4] sm:$0xf] }
  0x39   : > { %802 = vst [vmem:[%s1188_s13] sm:$0xf] %v800_v21  ;;  %v801_v26 = vadd.f32 %v799_v25, %v793_v18 }
  0x3a   : > { %v804_v27 = vld [vmem:[%s1207_s16] sm:$0xf] }
  0x3b   : > { %803 = vst [vmem:[%s1188_s13 + $0x4] sm:$0xf] %v801_v26  ;;  %v806_v28 = vadd.f32 %v804_v27, %v796_v22 }
  0x3c   : > { %v805_v29 = vld [vmem:[%s1207_s16 + $0x4] sm:$0xf] }
  0x3d   : > { %808 = vst [vmem:[%s1207_s16] sm:$0xf] %v806_v28  ;;  %v807_v30 = vadd.f32 %v805_v29, %v797_v23 }
  0x3f   : > { %809 = vst [vmem:[%s1207_s16 + $0x4] sm:$0xf] %v807_v30 }
  0x40 PF: > { %s16_s20 = sadd.s32 1, %s1081_s20   ;;  %s1293_s18 = smov %s1077_s19 }
  0x41   : > { %p13_p5 = scmp.ge.s32.totalorder %s16_s20, 4   ;;  %s1294_s19 = smov %s1296_s21 }
  0x43   :  { %15 = sbr.rel (!%p13_p5) target bundleno = 2 (0x2), region = 99 }

</bundles_post_ra>
